<compile_context>
chip_gen: v5e
topology: v5e:2x2
jax: 0.10.0
libtpu: 0.0.40
codegen_flags: <defaults>
</compile_context>

<pallas_src>
import functools

import jax
import jax.numpy as jnp
from jax.experimental import pallas as pl
from jax.experimental.pallas import tpu as pltpu


def _round_up(x: int, m: int) -> int:
    return ((x + m - 1) // m) * m


def mlp_kernel(x_ref, w1_ref, b1_ref, w2_ref, b2_ref, w3_ref, b3_ref, o_ref):
    """One batch tile of the fused MLP, computed transposed (rows on lanes)."""
    x = x_ref[...]                                    # (tb, F), rows on sublanes

    # fc1: contract both minor dims (same dot pattern as q @ k.T) -> (64, tb), with
    # the batch rows landing on the lane dimension.  f32 accumulation on the MXU.
    h1 = jax.lax.dot_general(
        w1_ref[...], x,
        dimension_numbers=(((1,), (1,)), ((), ())),
        preferred_element_type=jnp.float32,
    ) + b1_ref[...]                                   # bias (64, 1) broadcasts over lanes
    # dropout(0.25): identity in eval mode; then ReLU.
    h1 = jnp.maximum(h1, 0.0)

    # fc2: (32, 64) @ (64, tb) -> (32, tb)
    h2 = jnp.dot(
        w2_ref[...], h1.astype(w2_ref.dtype),
        preferred_element_type=jnp.float32,
    ) + b2_ref[...]
    h2 = jnp.maximum(h2, 0.0)

    # fc3 (out_features == 1): VPU multiply + sublane reduction.  The result is
    # already the lane-dense (1, tb) row we store -- no MXU matvec, no relayout.
    z = jnp.sum(h2 * w3_ref[...], axis=0, keepdims=True) + b3_ref[...]

    # Exact sigmoid: keeps probabilities strictly inside [0, 1]; exp runs on the EUP.
    o_ref[...] = (1.0 / (1.0 + jnp.exp(-z))).astype(o_ref.dtype)


@functools.partial(jax.jit, static_argnames=("block_batch", "use_bf16"))
def binary_classification_nn(x, params, *, block_batch=4096, use_bf16=False):
    """Forward pass of BinaryClassificationNN (eval mode). Returns (B, 1) float32."""
    w1, b1, w2, b2, w3, b3 = params
    B, in_features = x.shape

    if use_bf16:
        # Halve HBM traffic on the dominant stream (x) and on the MXU weights;
        # everything downstream of the MXU stays f32 in-kernel.
        x = x.astype(jnp.bfloat16)
        w1 = w1.astype(jnp.bfloat16)
        w2 = w2.astype(jnp.bfloat16)

    # Kernel-side parameter layout: biases as (out, 1) columns, w3 as a (32, 1)
    # column so they broadcast against the transposed (out, tb) activations.
    b1c = b1.reshape(-1, 1)
    b2c = b2.reshape(-1, 1)
    w3c = w3.reshape(-1, 1)
    b3c = b3.reshape(1, 1)

    # ---- batch tile selection ------------------------------------------------
    #  * tb is a multiple of 128 (lane-dense output tile; also covers bf16 sublane
    #    packing) unless a single block covers a tiny batch,
    #  * big default (4096) amortizes per-grid-step overhead and makes large DMAs,
    #  * capped at ~B/2 so the grid has >= 2 steps and the "parallel" batch axis
    #    can actually shard across v7x's two TensorCores (no-op on v5e/v6e).
    if B <= 128:
        tb = B                                        # single full-array block
    else:
        tb = min(block_batch, _round_up(B, 128))
        half = _round_up(pl.cdiv(B, 2), 128)
        tb = max(128, min(tb, half))
    grid = (pl.cdiv(B, tb),)

    # ---- explicit, padding-aware VMEM budget ----------------------------------
    lane = 128
    itemsize = jnp.dtype(x.dtype).itemsize
    f_pad = _round_up(in_features, lane)
    x_block = tb * f_pad * itemsize                   # (tb, F) block, lane-padded
    out_block = _round_up(tb, lane) * 4               # lane-dense (1, tb) f32 block
    interm = tb * (_round_up(in_features, 8) + 64 + 32 + 8) * 4   # transposed f32 temps
    weights = 2 * (64 * f_pad + 32 * lane + 32 * lane + 3 * 8 * lane) * 4
    vmem_limit = 2 * (x_block + out_block) + 2 * interm + weights + (4 << 20)
    vmem_limit = min(int(vmem_limit), 48 * 1024 * 1024)   # stay under v7x's 64 MiB

    batch_map = lambda i: (i, 0)          # x: tiled over batch rows (sublane dim)
    out_map = lambda i: (0, i)            # out: tiled over the lane-dense row
    resident = lambda i: (0, 0)           # weights/biases: same VMEM block every step

    in_specs = [
        pl.BlockSpec((tb, in_features), batch_map),
        pl.BlockSpec(w1.shape, resident),
        pl.BlockSpec(b1c.shape, resident),
        pl.BlockSpec(w2.shape, resident),
        pl.BlockSpec(b2c.shape, resident),
        pl.BlockSpec(w3c.shape, resident),
        pl.BlockSpec(b3c.shape, resident),
    ]
    out_spec = pl.BlockSpec((1, tb), out_map)

    out_row = pl.pallas_call(
        mlp_kernel,
        out_shape=jax.ShapeDtypeStruct((1, B), jnp.float32),
        grid=grid,
        in_specs=in_specs,
        out_specs=out_spec,
        compiler_params=pltpu.CompilerParams(
            dimension_semantics=("parallel",),
            vmem_limit_bytes=vmem_limit,
        ),
    )(x, w1, b1c, w2, b2c, w3c, b3c)

    # NOTE: folding the 16-wide feature dim into dense lanes via a block-diagonal W1'
    # (review's optional item) is intentionally not done; revisit only if profiling
    # shows the x DMA / VMEM padding is the limiter after the changes above.
    return out_row.reshape(B, 1)


def init_params(key, input_size):
    """Deterministic PyTorch-style init; weights in nn.Linear (out, in) layout."""
    ks = jax.random.split(key, 6)

    def linear(kw, kb, fan_in, fan_out):
        bound = 1.0 / (fan_in ** 0.5)
        w = jax.random.uniform(kw, (fan_out, fan_in), jnp.float32, -bound, bound)
        b = jax.random.uniform(kb, (fan_out,), jnp.float32, -bound, bound)
        return w, b

    w1, b1 = linear(ks[0], ks[1], input_size, 64)
    w2, b2 = linear(ks[2], ks[3], 64, 32)
    w3, b3 = linear(ks[4], ks[5], 32, 1)
    return (w1, b1, w2, b2, w3, b3)


def reference_forward(x, params):
    w1, b1, w2, b2, w3, b3 = params
    hp = jax.lax.Precision.HIGHEST
    h1 = jnp.maximum(jnp.dot(x, w1.T, precision=hp) + b1, 0.0)
    h2 = jnp.maximum(jnp.dot(h1, w2.T, precision=hp) + b2, 0.0)
    return jax.nn.sigmoid(jnp.dot(h2, w3.T, precision=hp) + b3)


if __name__ == "__main__":
    # TODO(synk): nn.Dropout(0.25) is identity in eval mode; training-mode RNG
    # masking is intentionally not modeled in this inference kernel.
    key = jax.random.PRNGKey(0)
    kx, kp, kx2 = jax.random.split(key, 3)

    input_size = 16  # stand-in for X_train.shape[1]
    params = init_params(kp, input_size)

    # Small deterministic check: single full-array block.
    x_small = jax.random.normal(kx, (16, input_size), dtype=jnp.float32)
    out_small = jax.block_until_ready(binary_classification_nn(x_small, params))
    ref_small = reference_forward(x_small, params)
    assert out_small.shape == (16, 1)
    err_small = float(jnp.max(jnp.abs(out_small - ref_small)))
    assert jnp.allclose(out_small, ref_small, atol=5e-3, rtol=0.0), err_small

    # Larger, non-multiple batch: exercises the multi-step parallel grid, the
    # lane-dense (1, tb) output tiles and the masked partial last block.
    x_big = jax.random.normal(kx2, (1000, input_size), dtype=jnp.float32)
    out_big = jax.block_until_ready(binary_classification_nn(x_big, params))
    ref_big = reference_forward(x_big, params)
    assert out_big.shape == (1000, 1)
    err_big = float(jnp.max(jnp.abs(out_big - ref_big)))
    assert jnp.allclose(out_big, ref_big, atol=5e-3, rtol=0.0), err_big

    # bf16 x/W streaming path (recommended inference default on v5e/v6e).
    out_bf16 = jax.block_until_ready(
        binary_classification_nn(x_big, params, use_bf16=True))
    assert out_bf16.shape == (1000, 1)
    err_bf16 = float(jnp.max(jnp.abs(out_bf16 - ref_big)))
    assert jnp.allclose(out_bf16, ref_big, atol=5e-2, rtol=0.0), err_bf16

    print("KERNEL_OK")
</pallas_src>

<mosaic_0001>
module attributes {stable_mosaic.version = 11 : i64} {
  func.func @mlp_kernel(%arg0: i32, %arg1: memref<16x16xf32, #tpu.memory_space<vmem>>, %arg2: memref<64x16xf32, #tpu.memory_space<vmem>>, %arg3: memref<64x1xf32, #tpu.memory_space<vmem>>, %arg4: memref<32x64xf32, #tpu.memory_space<vmem>>, %arg5: memref<32x1xf32, #tpu.memory_space<vmem>>, %arg6: memref<32x1xf32, #tpu.memory_space<vmem>>, %arg7: memref<1x1xf32, #tpu.memory_space<vmem>>, %arg8: memref<1x16xf32, #tpu.memory_space<vmem>>) attributes {dimension_semantics = [#tpu.dimension_semantics<parallel>], iteration_bounds = array<i64: 1>, scalar_prefetch = 0 : i64, scratch_operands = 0 : i64, tpu.core_type = #tpu.core_type<tc>, window_params = [{transform_indices = @transform_0, window_bounds = array<i64: 16, 16>}, {pipeline_mode = #tpu.pipeline_mode<synchronous>, transform_indices = @transform_1, window_bounds = array<i64: 64, 16>}, {pipeline_mode = #tpu.pipeline_mode<synchronous>, transform_indices = @transform_2, window_bounds = array<i64: 64, 1>}, {pipeline_mode = #tpu.pipeline_mode<synchronous>, transform_indices = @transform_3, window_bounds = array<i64: 32, 64>}, {pipeline_mode = #tpu.pipeline_mode<synchronous>, transform_indices = @transform_4, window_bounds = array<i64: 32, 1>}, {pipeline_mode = #tpu.pipeline_mode<synchronous>, transform_indices = @transform_5, window_bounds = array<i64: 32, 1>}, {pipeline_mode = #tpu.pipeline_mode<synchronous>, transform_indices = @transform_6, window_bounds = array<i64: 1, 1>}, {transform_indices = @transform_7, window_bounds = array<i64: 1, 16>}]} {
    %c0 = arith.constant 0 : index
    %c0_0 = arith.constant 0 : index
    %0 = vector.load %arg1[%c0, %c0_0] : memref<16x16xf32, #tpu.memory_space<vmem>>, vector<16x16xf32>
    %c0_1 = arith.constant 0 : index
    %c0_2 = arith.constant 0 : index
    %1 = vector.load %arg2[%c0_1, %c0_2] : memref<64x16xf32, #tpu.memory_space<vmem>>, vector<64x16xf32>
    %cst = arith.constant dense<0.000000e+00> : vector<64x16xf32>
    %2 = tpu.matmul %1, %0, %cst {dimension_numbers = #tpu.dot_dimension_numbers<[1], [1], [0], [0], [0, 0, 1, 0], [], []>} : vector<64x16xf32>, vector<16x16xf32>, vector<64x16xf32> -> vector<64x16xf32>
    %c0_3 = arith.constant 0 : index
    %c0_4 = arith.constant 0 : index
    %3 = vector.load %arg3[%c0_3, %c0_4] : memref<64x1xf32, #tpu.memory_space<vmem>>, vector<64x1xf32>
    %4 = vector.broadcast %3 : vector<64x1xf32> to vector<64x16xf32>
    %5 = arith.addf %2, %4 : vector<64x16xf32>
    %cst_5 = arith.constant 0.000000e+00 : f32
    %6 = vector.broadcast %cst_5 : f32 to vector<64x16xf32>
    %7 = arith.maximumf %5, %6 : vector<64x16xf32>
    %c0_6 = arith.constant 0 : index
    %c0_7 = arith.constant 0 : index
    %8 = vector.load %arg4[%c0_6, %c0_7] : memref<32x64xf32, #tpu.memory_space<vmem>>, vector<32x64xf32>
    %cst_8 = arith.constant dense<0.000000e+00> : vector<32x16xf32>
    %9 = tpu.matmul %8, %7, %cst_8 {dimension_numbers = #tpu.dot_dimension_numbers<[1], [0], [0], [1], [0, 0, 1, 1], [], []>} : vector<32x64xf32>, vector<64x16xf32>, vector<32x16xf32> -> vector<32x16xf32>
    %c0_9 = arith.constant 0 : index
    %c0_10 = arith.constant 0 : index
    %10 = vector.load %arg5[%c0_9, %c0_10] : memref<32x1xf32, #tpu.memory_space<vmem>>, vector<32x1xf32>
    %11 = vector.broadcast %10 : vector<32x1xf32> to vector<32x16xf32>
    %12 = arith.addf %9, %11 : vector<32x16xf32>
    %cst_11 = arith.constant 0.000000e+00 : f32
    %13 = vector.broadcast %cst_11 : f32 to vector<32x16xf32>
    %14 = arith.maximumf %12, %13 : vector<32x16xf32>
    %c0_12 = arith.constant 0 : index
    %c0_13 = arith.constant 0 : index
    %15 = vector.load %arg6[%c0_12, %c0_13] : memref<32x1xf32, #tpu.memory_space<vmem>>, vector<32x1xf32>
    %16 = vector.broadcast %15 : vector<32x1xf32> to vector<32x16xf32>
    %17 = arith.mulf %14, %16 : vector<32x16xf32>
    %cst_14 = arith.constant dense<0.000000e+00> : vector<16xf32>
    %18 = vector.multi_reduction <add>, %17, %cst_14 [0] : vector<32x16xf32> to vector<16xf32>
    %19 = vector.shape_cast %18 : vector<16xf32> to vector<1x16xf32>
    %c0_15 = arith.constant 0 : index
    %c0_16 = arith.constant 0 : index
    %20 = vector.load %arg7[%c0_15, %c0_16] : memref<1x1xf32, #tpu.memory_space<vmem>>, vector<1x1xf32>
    %21 = vector.broadcast %20 : vector<1x1xf32> to vector<1x16xf32>
    %22 = arith.addf %19, %21 : vector<1x16xf32>
    %cst_17 = arith.constant 0.000000e+00 : f32
    %23 = vector.broadcast %cst_17 : f32 to vector<1x16xf32>
    %24 = arith.subf %23, %22 : vector<1x16xf32>
    %25 = math.exp %24 : vector<1x16xf32>
    %cst_18 = arith.constant 1.000000e+00 : f32
    %26 = vector.broadcast %cst_18 : f32 to vector<1x16xf32>
    %27 = arith.addf %26, %25 : vector<1x16xf32>
    %cst_19 = arith.constant 1.000000e+00 : f32
    %28 = vector.broadcast %cst_19 : f32 to vector<1x16xf32>
    %29 = arith.divf %28, %27 : vector<1x16xf32>
    %c0_20 = arith.constant 0 : index
    %c0_21 = arith.constant 0 : index
    %30 = vector.load %arg8[%c0_20, %c0_21] : memref<1x16xf32, #tpu.memory_space<vmem>>, vector<1x16xf32>
    tpu.vector_store %arg8[%c0_20, %c0_21], %29 {strides = array<i32>} : memref<1x16xf32, #tpu.memory_space<vmem>>, vector<1x16xf32>,
    return
  }
  func.func @transform_0(%arg0: i32) -> (i32, i32) {
    %c0_i32 = arith.constant 0 : i32
    %c0_i32_0 = arith.constant 0 : i32
    return %arg0, %c0_i32 : i32, i32
  }
  func.func @transform_1(%arg0: i32) -> (i32, i32) {
    %c0_i32 = arith.constant 0 : i32
    %c0_i32_0 = arith.constant 0 : i32
    %c0_i32_1 = arith.constant 0 : i32
    return %c0_i32, %c0_i32_0 : i32, i32
  }
  func.func @transform_2(%arg0: i32) -> (i32, i32) {
    %c0_i32 = arith.constant 0 : i32
    %c0_i32_0 = arith.constant 0 : i32
    %c0_i32_1 = arith.constant 0 : i32
    return %c0_i32, %c0_i32_0 : i32, i32
  }
  func.func @transform_3(%arg0: i32) -> (i32, i32) {
    %c0_i32 = arith.constant 0 : i32
    %c0_i32_0 = arith.constant 0 : i32
    %c0_i32_1 = arith.constant 0 : i32
    return %c0_i32, %c0_i32_0 : i32, i32
  }
  func.func @transform_4(%arg0: i32) -> (i32, i32) {
    %c0_i32 = arith.constant 0 : i32
    %c0_i32_0 = arith.constant 0 : i32
    %c0_i32_1 = arith.constant 0 : i32
    return %c0_i32, %c0_i32_0 : i32, i32
  }
  func.func @transform_5(%arg0: i32) -> (i32, i32) {
    %c0_i32 = arith.constant 0 : i32
    %c0_i32_0 = arith.constant 0 : i32
    %c0_i32_1 = arith.constant 0 : i32
    return %c0_i32, %c0_i32_0 : i32, i32
  }
  func.func @transform_6(%arg0: i32) -> (i32, i32) {
    %c0_i32 = arith.constant 0 : i32
    %c0_i32_0 = arith.constant 0 : i32
    %c0_i32_1 = arith.constant 0 : i32
    return %c0_i32, %c0_i32_0 : i32, i32
  }
  func.func @transform_7(%arg0: i32) -> (i32, i32) {
    %c0_i32 = arith.constant 0 : i32
    %c0_i32_0 = arith.constant 0 : i32
    return %c0_i32, %arg0 : i32, i32
  }
}

</mosaic_0001>

<bundles_post_ra>
// kernel: binary_classification_nn.1
= control target key start
LH: loop header
LB: loop body
LE: loop exit
PB: predicated region body
PF: predicated region fallthrough
CT: control target
= control target key end

     0   :  { %s540_s0 = inlined_call_operand.vmem [shape: f32[16,16], index: 0, kind: input, shape index: {}]   ;;  %s541_s1 = inlined_call_operand.vmem [shape: f32[64,16], index: 1, kind: input, shape index: {}]   ;;  %s542_s2 = inlined_call_operand.vmem [shape: f32[64,1], index: 2, kind: input, shape index: {}]   ;;  %s543_s3 = inlined_call_operand.vmem [shape: f32[32,64], index: 3, kind: input, shape index: {}]   ;;  %s544_s4 = inlined_call_operand.vmem [shape: f32[32,1], index: 4, kind: input, shape index: {}]   ;;  %s545_s5 = inlined_call_operand.vmem [shape: f32[32,1], index: 5, kind: input, shape index: {}]   ;;  %s546_s6 = inlined_call_operand.<no memory space> [shape: f32[1,1], index: 6, kind: input, shape index: {}]   ;;  %s547_s7 = inlined_call_operand.hbm [shape: f32[1,16], index: 7, kind: output, shape index: {}]  }
   0x1   :  { %v12_v0 = vstv %s546_s6 }
   0x2   :  { %13 = vst [vmem:[#allocation2] sm:$0x1] %v12_v0 }
   0x3   :  { %v30_v1 = vld [vmem:[%s540_s0 + $0x8] sm:$0xff]  ;;  %vm87_vm0 = vcmask 130048   ;;  %v386_v2 = vmov 0   ;;  %v46_v3 = vld [vmem:[%s542_s2 + $0x38] sm:$0xff]  ;;  %v29_v5 = vld [vmem:[%s540_s0] sm:$0xff] }
   0x4   :  { %341 = vmatpush.xpose.msk.msra.mxu2 %vm87_vm0, %v30_v1  ;;  %353 = vset.pattern.permute.xlu0 %v386_v2  ;;  %v44_v4 = vld [vmem:[%s542_s2 + $0x28] sm:$0xff]  ;;  %v34_v6 = vld [vmem:[%s541_s1 + $0x18] sm:$0xff] }
   0x5   :  { %84 = vperm.xlu0 %353, %v46_v3   ;;  %354 = vset.pattern.permute.xlu1 %v386_v2 }
   0x6   :  { %74 = vperm.xlu1 %354, %v44_v4   ;;  %327 = vmatpush.xpose.msk.msra.mxu0 %vm87_vm0, %v30_v1 }
   0x7   :  { %355 = vset.pattern.permute.xlu2 %v386_v2 }
   0x8   :  { %342 = vmatpush.xpose.msk.msra.mxu2 %vm87_vm0, %v29_v5 }
   0x9   :  { %14 = vsyncpa [#allocation4], 0  ;;  %v45_v7 = vld [vmem:[%s542_s2 + $0x30] sm:$0xff]  ;;  %v31_v8 = vld [vmem:[%s541_s1] sm:$0xff]  ;;  %vm195_vm1 = vcmask 523264   ;;  %vm309_vm5 = vcmask 122880  }
   0xa   :  { %328 = vmatpush.xpose.msk.msra.mxu0 %vm87_vm0, %v29_v5  ;;  %v43_v9 = vld [vmem:[%s542_s2 + $0x20] sm:$0xff]  ;;  %v42_v10 = vld [vmem:[%s542_s2 + $0x18] sm:$0xff]  ;;  %v40_v12 = vld [vmem:[%s542_s2 + $0x8] sm:$0xff] }
   0xb   :  { %332 = vmatmul.msk.f32.vlgmr.msra.gmra.mxu2 %vm87_vm0, %v34_v6  ;;  %64 = vperm.xlu2 %355, %v42_v10   ;;  %v35_v11 = vld [vmem:[%s541_s1 + $0x20] sm:$0xff]  ;;  %v32_v13 = vld [vmem:[%s541_s1 + $0x8] sm:$0xff]  ;;  %v41_v15 = vld [vmem:[%s542_s2 + $0x10] sm:$0xff] }
   0xc   :  { %v39_v14 = vld [vmem:[%s542_s2] sm:$0xff]  ;;  %v36_v16 = vld [vmem:[%s541_s1 + $0x28] sm:$0xff]  ;;  %v33_v18 = vld [vmem:[%s541_s1 + $0x10] sm:$0xff]  ;;  %s318_s2 = sshll.u32 %s547_s7, 4  ;;  %s319_s2 = int_to_ptr.hbm [resolvable:$true] %s318_s2 }
   0xd   :  { %79 = vperm.xlu0 %353, %v45_v7   ;;  %329 = vmatmul.msk.f32.vlgmr.msra.gmra.mxu0 %vm87_vm0, %v31_v8  ;;  %v172_v17 = vld [vmem:[%s544_s4 + $0x8] sm:$0xff]  ;;  %v173_v19 = vld [vmem:[%s544_s4 + $0x10] sm:$0xff]  ;;  %v171_v20 = vld [vmem:[%s544_s4] sm:$0xff] }
   0xe   :  { %69 = vperm.xlu1 %354, %v43_v9   ;;  %v37_v21 = vld [vmem:[%s541_s1 + $0x30] sm:$0xff]  ;;  %v241_v22 = vld [vmem:[%s545_s5] sm:$0xff]  ;;  %v242_v23 = vld [vmem:[%s545_s5 + $0x8] sm:$0xff] }
   0xf   :  { %v174_v24 = vld [vmem:[%s544_s4 + $0x18] sm:$0xff]  ;;  %v282_v27 = vld [vmem:[#allocation2] sm:$0x1]  ;;  %v243_v28 = vld [vmem:[%s545_s5 + $0x10] sm:$0xff] }
  0x10   :  { %v38_v25 = vld [vmem:[%s541_s1 + $0x38] sm:$0xff]  ;;  %v167_v61 = vld [vmem:[%s543_s3] sm:$0xff]  ;;  %v168_v62 = vld [vmem:[%s543_s3 + $0x8] sm:$0xff] }
  0x11   :  { %v244_v26 = vld [vmem:[%s545_s5 + $0x18] sm:$0xff]  ;;  %v169_v63 = vld [vmem:[%s543_s3 + $0x10] sm:$0xff] }
  0x12   :  { %v170_v0 = vld [vmem:[%s543_s3 + $0x18] sm:$0xff]  ;;  %s387_s3 = smov [#allocation3]  }
  0x13   :  { %333 = vmatmul.msk.f32.gmra.mxu2 %vm87_vm0, %v35_v11  ;;  %59 = vperm.xlu2 %355, %v41_v15   ;;  %s316_s9 = sshll.u32 %s387_s3, 4  ;;  %s317_s9 = int_to_ptr.vmem [resolvable:$true] %s316_s9 }
  0x15   :  { %54 = vperm.xlu0 %353, %v40_v12   ;;  %330 = vmatmul.msk.f32.gmra.mxu0 %vm87_vm0, %v32_v13 }
  0x16   :  { %49 = vperm.xlu1 %354, %v39_v14  }
  0x1b   :  { %334 = vmatmul.msk.f32.gmra.mxu2 %vm87_vm0, %v36_v16  ;;  %177 = vperm.xlu2 %355, %v171_v20  }
  0x1d   :  { %182 = vperm.xlu0 %353, %v172_v17   ;;  %331 = vmatmul.msk.f32.gmra.mxu0 %vm87_vm0, %v33_v18 }
  0x1e   :  { %187 = vperm.xlu1 %354, %v173_v19  }
  0x23   :  { %335 = vmatmul.msk.f32.gmra.mxu2 %vm87_vm0, %v37_v21  ;;  %192 = vperm.xlu2 %355, %v174_v24  }
  0x25   :  { %247 = vperm.xlu0 %353, %v241_v22  }
  0x26   :  { %252 = vperm.xlu1 %354, %v242_v23  }
  0x2b   :  { %336 = vmatmul.msk.f32.gmra.mxu2 %vm87_vm0, %v38_v25  ;;  %257 = vperm.xlu2 %355, %v243_v28  }
  0x2d   :  { %262 = vperm.xlu0 %353, %v244_v26  }
  0x2e   :  { %285 = vperm.xlu1 %354, %v282_v27  }
  0x65   :  { %v65_v37 = vpop.permute.xlu2 %64 }
  0x6d   :  { %v60_v50 = vpop.permute.xlu2 %59 }
  0x75   :  { %v178_v1 = vpop.permute.xlu2 %177 }
  0x77   :  { %v85_v33 = vpop.permute.xlu0 %84 }
  0x78   :  { %v75_v34 = vpop.permute.xlu1 %74 }
  0x7d   :  { %v193_v5 = vpop.permute.xlu2 %192 }
  0x7f   :  { %v80_v38 = vpop.permute.xlu0 %79 }
  0x80   :  { %v70_v42 = vpop.permute.xlu1 %69 }
  0x85   :  { %v258_v17 = vpop.permute.xlu2 %257 }
  0x87   :  { %v55_v53 = vpop.permute.xlu0 %54 }
  0x88   :  { %v50_v56 = vpop.permute.xlu1 %49 }
  0x8a   :  { %v135_v32 = vpop.f32.mrf.mxu0 }
  0x8b   :  { %v136_v57 = vadd.f32 %v135_v32, %v50_v56 }
  0x8d   :  { %v159_v60 = vmax.f32 %v136_v57, 0.0 }
  0x8e   :  { %v144_v29 = vpop.f32.mrf.mxu2 }
  0x8f   :  { %v145_v48 = vadd.f32 %v144_v29, %v65_v37  ;;  %v183_v2 = vpop.permute.xlu0 %182 }
  0x90   :  { %v188_v4 = vpop.permute.xlu1 %187 }
  0x91   :  { %v162_v54 = vmax.f32 %v145_v48, 0.0 }
  0x92   :  { %v138_v36 = vpop.f32.mrf.mxu0 }
  0x93   :  { %v139_v55 = vadd.f32 %v138_v36, %v55_v53 }
  0x95   :  { %v160_v59 = vmax.f32 %v139_v55, 0.0 }
  0x96   :  { %v147_v30 = vpop.f32.mrf.mxu2 }
  0x97   :  { %v148_v45 = vadd.f32 %v147_v30, %v70_v42  ;;  %v248_v12 = vpop.permute.xlu0 %247 }
  0x98   :  { %v253_v15 = vpop.permute.xlu1 %252 }
  0x99   :  { %v163_v51 = vmax.f32 %v148_v45, 0.0 }
  0x9a   :  { %v141_v47 = vpop.f32.mrf.mxu0 }
  0x9b   :  { %v142_v52 = vadd.f32 %v141_v47, %v60_v50 }
  0x9d   :  { %v161_v58 = vmax.f32 %v142_v52, 0.0 }
  0x9e   :  { %v150_v31 = vpop.f32.mrf.mxu2 }
  0x9f   :  { %v151_v43 = vadd.f32 %v150_v31, %v75_v34  ;;  %v263_v26 = vpop.permute.xlu0 %262 }
  0xa0   :  { %v286_v36 = vpop.permute.xlu1 %285 }
  0xa1   :  { %v164_v49 = vmax.f32 %v151_v43, 0.0 }
  0xa6   :  { %v153_v35 = vpop.f32.mrf.mxu2 }
  0xa7   :  { %v154_v40 = vadd.f32 %v153_v35, %v80_v38  ;;  %v288_v38 = vperm.slane %v286_v36, 0 }
  0xa9   :  { %v165_v46 = vmax.f32 %v154_v40, 0.0 }
  0xae   :  { %v156_v39 = vpop.f32.mrf.mxu2 }
  0xaf   :  { %v157_v41 = vadd.f32 %v156_v39, %v85_v33 }
  0xb1   :  { %v166_v44 = vmax.f32 %v157_v41, 0.0 }
  0xb3   :  { %216 = vmatpush.msra.mxu1 %v166_v44  ;;  %343 = vmatpush.msra.mxu3 %v166_v44 }
  0xb5   :  { %217 = vmatpush.msra.mxu1 %v165_v46  ;;  %344 = vmatpush.msra.mxu3 %v165_v46 }
  0xb7   :  { %218 = vmatpush.msra.mxu1 %v164_v49  ;;  %345 = vmatpush.msra.mxu3 %v164_v49 }
  0xb9   :  { %219 = vmatpush.msra.mxu1 %v163_v51  ;;  %346 = vmatpush.msra.mxu3 %v163_v51 }
  0xbb   :  { %220 = vmatpush.msra.mxu1 %v162_v54  ;;  %347 = vmatpush.msra.mxu3 %v162_v54 }
  0xbd   :  { %221 = vmatpush.msra.mxu1 %v161_v58  ;;  %348 = vmatpush.msra.mxu3 %v161_v58 }
  0xbf   :  { %222 = vmatpush.msra.mxu1 %v160_v59  ;;  %349 = vmatpush.msra.mxu3 %v160_v59 }
  0xc1   :  { %223 = vmatpush.msra.mxu1 %v159_v60  ;;  %350 = vmatpush.msra.mxu3 %v159_v60 }
  0xc2   :  { %337 = vmatmul.msk.f32.vlgmr.msra.gmra.mxu1 %vm195_vm1, %v167_v61  ;;  %338 = vmatmul.msk.f32.vlgmr.msra.gmra.mxu3 %vm195_vm1, %v168_v62 }
  0xca   :  { %339 = vmatmul.msk.f32.gmra.mxu3 %vm195_vm1, %v169_v63 }
  0xd2   :  { %340 = vmatmul.msk.f32.gmra.mxu3 %vm195_vm1, %v170_v0 }
 0x13f   :  { %v225_v6 = vpop.f32.mrf.mxu1 }
 0x140   :  { %v226_v8 = vadd.f32 %v225_v6, %v178_v1 }
 0x142   :  { %v237_v13 = vmax.f32 %v226_v8, 0.0 }
 0x144   :  { %v265_v18 = vmul.f32 %v248_v12, %v237_v13 }
 0x145   :  { %v228_v3 = vpop.f32.mrf.mxu3 }
 0x146   :  { %v229_v7 = vadd.f32 %v228_v3, %v183_v2  ;;  %v269_v23 = vsel %vm87_vm0, %v265_v18, 0.0 }
 0x148   :  { %v238_v10 = vmax.f32 %v229_v7, 0.0 }
 0x14a   :  { %v266_v16 = vmul.f32 %v253_v15, %v238_v10 }
 0x14c   :  { %v270_v21 = vsel %vm87_vm0, %v266_v16, 0.0 }
 0x14d   :  { %v231_v9 = vpop.f32.mrf.mxu3  ;;  %v271_v27 = vadd.f32 %v270_v21, %v269_v23 }
 0x14e   :  { %v232_v11 = vadd.f32 %v231_v9, %v188_v4 }
 0x150   :  { %v239_v14 = vmax.f32 %v232_v11, 0.0 }
 0x152   :  { %v267_v19 = vmul.f32 %v258_v17, %v239_v14 }
 0x154   :  { %v272_v24 = vsel %vm87_vm0, %v267_v19, 0.0 }
 0x155   :  { %v234_v20 = vpop.f32.mrf.mxu3  ;;  %v273_v29 = vadd.f32 %v272_v24, %v271_v27 }
 0x156   :  { %v235_v22 = vadd.f32 %v234_v20, %v193_v5 }
 0x158   :  { %v240_v25 = vmax.f32 %v235_v22, 0.0 }
 0x15a   :  { %v268_v28 = vmul.f32 %v263_v26, %v240_v25 }
 0x15c   :  { %v274_v30 = vsel %vm87_vm0, %v268_v28, 0.0 }
 0x15d   :  { %v275_v31 = vadd.f32 %v274_v30, %v273_v29 }
 0x15f   :  { %v276_v32 = vrot.slane %v275_v31, 4 }
 0x161   :  { %v277_v33 = vadd.f32 %v276_v32, %v275_v31 }
 0x163   :  { %v278_v34 = vrot.slane %v277_v33, 2 }
 0x165   :  { %v279_v35 = vadd.f32 %v278_v34, %v277_v33 }
 0x167   :  { %v280_v37 = vrot.slane %v279_v35, 1 }
 0x169   :  { %v281_v39 = vadd.f32 %v280_v37, %v279_v35 }
 0x16b   :  { %v289_v40 = vadd.f32 %v288_v38, %v281_v39 }
 0x16d   :  { %v290_v41 = vsub.f32 0.0, %v289_v40 }
 0x16f   :  { %v291_v42 = vmul.f32 1.442695, %v290_v41 }
 0x171   :  { %356 = vpow2.f32 %v291_v42 }
 0x177   :  { %v357_v43 = vpop.eup %356 }
 0x178   :  { %v293_v44 = vadd.f32 1.0, %v357_v43 }
 0x17a   :  { %358 = vrcp.f32 %v293_v44  ;;  %v305_v48 = vand.u32 2147483648, %v293_v44  ;;  %v303_v50 = vand.u32 2147483647, %v293_v44  ;;  %vm299_vm3 = vweird.f32 %v293_v44 }
 0x17c   :  { %v306_v52 = vor.u32 1.1754944e-38, %v305_v48  ;;  %vm304_vm6 = vcmp.eq.f32.partialorder %v303_v50, 8.507059e+37 }
 0x180   :  { %v359_v45 = vpop.eup %358 }
 0x181   :  { %v295_v46 = vmul.f32 %v359_v45, %v293_v44  ;;  %vm300_vm2 = vweird.f32 %v359_v45 }
 0x182   :  { %vm301_vm4 = vmor %vm299_vm3, %vm300_vm2 }
 0x183   :  { %v296_v47 = vsub.f32 1.0, %v295_v46 }
 0x185   :  { %v297_v49 = vmul.f32 %v359_v45, %v296_v47 }
 0x187   :  { %v298_v51 = vadd.f32 %v359_v45, %v297_v49 }
 0x189   :  { %v302_v53 = vsel %vm301_vm4, %v359_v45, %v298_v51 }
 0x18a   :  { %v307_v54 = vsel %vm304_vm6, %v306_v52, %v302_v53 }
 0x18b   :  { %310 = vst.msk [vmem:[#allocation3] sm:$0x1] %vm309_vm5, %v307_v54 }
 0x18c   :  { %321 = dma.vmem_to_hbm [thread:$0]  %s317_s9, 16, %s319_s2, [#allocation4]  }
 0x18d   :  { %384 = dma.done.wait [#allocation4], 16  }
 0x18e   :  { %385 = vsyncadd [#allocation4], 4294967280 }
 0x18f   :  { %326 = vsyncpa [#allocation4], 1 }

</bundles_post_ra>
